<compile_context>
chip_gen: v6e
topology: v6e:2x2x1
jax: 0.10.0
libtpu: 0.0.40
codegen_flags: <defaults>
</compile_context>

<pallas_src>
import jax
import jax.numpy as jnp
from jax.experimental import pallas as pl
from jax.experimental.pallas import tpu as pltpu


_LANE = 128
_TARGET_BLOCK_BYTES = 6 * 1024 * 1024    # per input block (review: 6-8 MiB)
_VMEM_MODEL_BUDGET = 32 * 1024 * 1024    # modeled footprint cap for auto block sizing
_VMEM_LIMIT_BYTES = 48 * 1024 * 1024     # scoped VMEM ask (v7x-safe: 64 MiB physical)
_MAX_BLOCK_ROWS = 32768


def _round_down(v, m):
    return (v // m) * m


def _round_up(v, m):
    return ((v + m - 1) // m) * m


def _choose_block_b(batch, row_elems, in_itemsize, out_row_bytes):
    """Largest batch tile fitting the modeled VMEM footprint and the DMA-block target."""
    in_row = row_elems * in_itemsize            # one input row in the VMEM tile
    tmp_row = 2 * row_elems * 4                 # f32 temporaries (x^2, hi/lo split, ...)
    per_row = 2 * in_row + tmp_row + 2 * out_row_bytes   # double-buffered in/out + temps
    rows = min(_TARGET_BLOCK_BYTES // max(in_row, 1),
               _VMEM_MODEL_BUDGET // max(per_row, 1),
               _MAX_BLOCK_ROWS)
    if rows >= batch:
        return batch                            # single full-batch block (always legal)
    return max(_LANE, _round_down(rows, _LANE)) # lane/sublane-friendly multiple of 128


def _make_fm_kernel(num_fields, embed_dim, reduce_sum, lane_dense_out):
    F, D = num_fields, embed_dim
    del F  # field structure is carried entirely by the selection matrix

    def exact_field_dot(a, sel_b):
        """sum over fields via MXU: a (blk, F*D) @ sel (F*D, D) -> (blk, D) f32.

        sel is an exact 0/1 bf16 matrix.  For f32 operands we split into bf16
        hi/lo parts (2 MXU passes) so the result is accurate to ~f32 level instead
        of the single truncated-bf16 pass a default-precision f32 dot would use.
        """
        if a.dtype == jnp.bfloat16:
            return jnp.dot(a, sel_b, preferred_element_type=jnp.float32)
        hi = a.astype(jnp.bfloat16)
        lo = (a - hi.astype(jnp.float32)).astype(jnp.bfloat16)
        return (jnp.dot(hi, sel_b, preferred_element_type=jnp.float32)
                + jnp.dot(lo, sel_b, preferred_element_type=jnp.float32))

    def kernel(x_ref, sel_ref, o_ref):
        x = x_ref[...]                                   # (blk, F*D), lane-dense
        sel_b = sel_ref[...]                             # (F*D, D) bf16 0/1
        s = exact_field_dot(x, sel_b)                    # (blk, D) field sums, f32
        xf = x.astype(jnp.float32)
        xsq = xf * xf                                    # (blk, F*D), full lane width
        if reduce_sum:
            sos = jnp.sum(s * s, axis=1, keepdims=True)  # (blk, 1) sum_d (sum_f x)^2
            ss = jnp.sum(xsq, axis=1, keepdims=True)     # (blk, 1) sum_{f,d} x^2
            res = 0.5 * (sos - ss)                       # (blk, 1) f32
            if lane_dense_out:
                # sublane->lane relayout of the per-row scalars -> (1, blk) row.
                o_ref[...] = jnp.transpose(res).astype(o_ref.dtype)
            else:
                o_ref[...] = res.astype(o_ref.dtype)
        else:
            ssd = exact_field_dot(xsq, sel_b)            # (blk, D) sum_f x^2
            o_ref[...] = (0.5 * (s * s - ssd)).astype(o_ref.dtype)

    return kernel


def _fm_pallas_call(x_flat, sel, num_fields, embed_dim, reduce_sum, block_b,
                    lane_dense_out):
    B, R = x_flat.shape
    D = embed_dim
    out_dtype = x_flat.dtype

    in_specs = [
        pl.BlockSpec((block_b, R), lambda i: (i, 0)),
        pl.BlockSpec((R, D), lambda i: (0, 0)),          # small constant, same block every step
    ]
    if reduce_sum:
        if lane_dense_out:
            out_shape = jax.ShapeDtypeStruct((1, B), out_dtype)
            out_spec = pl.BlockSpec((1, block_b), lambda i: (0, i))
        else:
            out_shape = jax.ShapeDtypeStruct((B, 1), out_dtype)
            out_spec = pl.BlockSpec((block_b, 1), lambda i: (i, 0))
    else:
        out_shape = jax.ShapeDtypeStruct((B, D), out_dtype)
        out_spec = pl.BlockSpec((block_b, D), lambda i: (i, 0))

    kernel = _make_fm_kernel(num_fields, embed_dim, reduce_sum, lane_dense_out)
    grid = (pl.cdiv(B, block_b),)                        # masked tail block if needed

    return pl.pallas_call(
        kernel,
        out_shape=out_shape,
        grid_spec=pltpu.PrefetchScalarGridSpec(
            num_scalar_prefetch=0,
            grid=grid,
            in_specs=in_specs,
            out_specs=out_spec,
        ),
        compiler_params=pltpu.CompilerParams(
            dimension_semantics=("parallel",),
            vmem_limit_bytes=_VMEM_LIMIT_BYTES,
        ),
    )(x_flat, sel)


def fm_operation(x, reduce_sum=True, block_b=None):
    """Pallas TPU implementation of FM_operation.forward.

    x: (B, F, D) array. Returns (B, 1) if reduce_sum else (B, D), in x.dtype
    (float32 / bfloat16 supported; other dtypes are upcast to float32).
    """
    B, F, D = x.shape
    if x.dtype not in (jnp.float32, jnp.bfloat16):
        x = x.astype(jnp.float32)  # TODO(synk): only f32/bf16 fast paths are implemented
    R = F * D
    x_flat = x.reshape(B, R)                              # free, contiguous, lane-dense
    sel = jnp.tile(jnp.eye(D, dtype=jnp.bfloat16), (F, 1))  # (F*D, D) 0/1 selection

    itemsize = jnp.dtype(x.dtype).itemsize
    if reduce_sum:
        out_row_bytes = 8 * itemsize                      # (1, blk) tile pads sublanes to 8
    else:
        out_row_bytes = _round_up(max(D, 1), _LANE) * itemsize  # (blk, D) pads lanes to 128

    if block_b is None:
        block_b = _choose_block_b(B, R, itemsize, out_row_bytes)
    else:
        block_b = int(block_b)
        block_b = B if block_b >= B else max(_LANE, _round_down(block_b, _LANE))

    if reduce_sum:
        # Eager pallas_call compiles Mosaic inside the call, so a lowering failure of
        # the in-kernel sublane->lane relayout is catchable here and we fall back to
        # the known-good sublane-major (B, 1) output layout.
        try:
            out = _fm_pallas_call(x_flat, sel, F, D, True, block_b, True)   # (1, B)
            return out.reshape(B, 1)
        except Exception:
            return _fm_pallas_call(x_flat, sel, F, D, True, block_b, False)  # (B, 1)
    return _fm_pallas_call(x_flat, sel, F, D, False, block_b, False)


def fm_operation_ref(x, reduce_sum=True):
    square_of_sum = jnp.sum(x, axis=1) ** 2
    sum_of_square = jnp.sum(x ** 2, axis=1)
    ix = square_of_sum - sum_of_square
    if reduce_sum:
        ix = jnp.sum(ix, axis=1, keepdims=True)
    return 0.5 * ix


if __name__ == "__main__":
    key = jax.random.PRNGKey(0)
    B, F, D = 16, 4, 32  # batch, num_fields, embed_dim
    x = jax.random.normal(key, (B, F, D), dtype=jnp.float32)

    # reduce_sum=True (module default)
    out = jax.block_until_ready(fm_operation(x, reduce_sum=True))
    ref = fm_operation_ref(x, reduce_sum=True)
    assert out.shape == (B, 1), out.shape
    assert jnp.allclose(out, ref, atol=1e-3, rtol=1e-4), "mismatch (reduce_sum=True)"

    # reduce_sum=False
    out2 = jax.block_until_ready(fm_operation(x, reduce_sum=False))
    ref2 = fm_operation_ref(x, reduce_sum=False)
    assert out2.shape == (B, D), out2.shape
    assert jnp.allclose(out2, ref2, atol=1e-3, rtol=1e-4), "mismatch (reduce_sum=False)"

    # non-divisible batch with a multi-block grid (exercises masked tail + lane-dense out)
    B2 = 300
    x2 = jax.random.normal(jax.random.PRNGKey(1), (B2, F, D), dtype=jnp.float32)
    out3 = jax.block_until_ready(fm_operation(x2, reduce_sum=True, block_b=128))
    ref3 = fm_operation_ref(x2, reduce_sum=True)
    assert out3.shape == (B2, 1), out3.shape
    assert jnp.allclose(out3, ref3, atol=1e-3, rtol=1e-4), "mismatch (masked tail)"

    # bf16 input path (f32 accumulation in-kernel, bf16 output like the module)
    xb = x.astype(jnp.bfloat16)
    out4 = jax.block_until_ready(fm_operation(xb, reduce_sum=True))
    ref4 = fm_operation_ref(xb.astype(jnp.float32), reduce_sum=True)
    assert out4.dtype == jnp.bfloat16
    assert jnp.allclose(out4.astype(jnp.float32), ref4, atol=0.5, rtol=0.05), "mismatch (bf16)"

    print("KERNEL_OK")
</pallas_src>

<mosaic_0001>
module attributes {stable_mosaic.version = 11 : i64} {
  func.func @kernel(%arg0: i32, %arg1: memref<16x128xf32, #tpu.memory_space<vmem>>, %arg2: memref<128x32xbf16, #tpu.memory_space<vmem>>, %arg3: memref<1x16xf32, #tpu.memory_space<vmem>>) attributes {dimension_semantics = [#tpu.dimension_semantics<parallel>], iteration_bounds = array<i64: 1>, scalar_prefetch = 0 : i64, scratch_operands = 0 : i64, tpu.core_type = #tpu.core_type<tc>, window_params = [{transform_indices = @transform_0, window_bounds = array<i64: 16, 128>}, {pipeline_mode = #tpu.pipeline_mode<synchronous>, transform_indices = @transform_1, window_bounds = array<i64: 128, 32>}, {transform_indices = @transform_2, window_bounds = array<i64: 1, 16>}]} {
    %c0 = arith.constant 0 : index
    %c0_0 = arith.constant 0 : index
    %0 = vector.load %arg1[%c0, %c0_0] : memref<16x128xf32, #tpu.memory_space<vmem>>, vector<16x128xf32>
    %c0_1 = arith.constant 0 : index
    %c0_2 = arith.constant 0 : index
    %1 = vector.load %arg2[%c0_1, %c0_2] : memref<128x32xbf16, #tpu.memory_space<vmem>>, vector<128x32xbf16>
    %2 = arith.truncf %0 : vector<16x128xf32> to vector<16x128xbf16>
    %3 = arith.extf %2 : vector<16x128xbf16> to vector<16x128xf32>
    %4 = arith.subf %0, %3 : vector<16x128xf32>
    %5 = arith.truncf %4 : vector<16x128xf32> to vector<16x128xbf16>
    %cst = arith.constant dense<0.000000e+00> : vector<16x32xf32>
    %6 = tpu.matmul %2, %1, %cst {dimension_numbers = #tpu.dot_dimension_numbers<[1], [0], [0], [1], [0, 0, 1, 1], [], []>} : vector<16x128xbf16>, vector<128x32xbf16>, vector<16x32xf32> -> vector<16x32xf32>
    %cst_3 = arith.constant dense<0.000000e+00> : vector<16x32xf32>
    %7 = tpu.matmul %5, %1, %cst_3 {dimension_numbers = #tpu.dot_dimension_numbers<[1], [0], [0], [1], [0, 0, 1, 1], [], []>} : vector<16x128xbf16>, vector<128x32xbf16>, vector<16x32xf32> -> vector<16x32xf32>
    %8 = arith.addf %6, %7 : vector<16x32xf32>
    %9 = arith.mulf %0, %0 : vector<16x128xf32>
    %10 = arith.mulf %8, %8 : vector<16x32xf32>
    %cst_4 = arith.constant dense<0.000000e+00> : vector<16xf32>
    %11 = vector.multi_reduction <add>, %10, %cst_4 [1] : vector<16x32xf32> to vector<16xf32>
    %12 = vector.shape_cast %11 : vector<16xf32> to vector<16x1xf32>
    %cst_5 = arith.constant dense<0.000000e+00> : vector<16xf32>
    %13 = vector.multi_reduction <add>, %9, %cst_5 [1] : vector<16x128xf32> to vector<16xf32>
    %14 = vector.shape_cast %13 : vector<16xf32> to vector<16x1xf32>
    %15 = arith.subf %12, %14 : vector<16x1xf32>
    %cst_6 = arith.constant 5.000000e-01 : f32
    %16 = vector.broadcast %cst_6 : f32 to vector<16x1xf32>
    %17 = arith.mulf %16, %15 : vector<16x1xf32>
    %18 = tpu.transpose %17, [1, 0] : vector<16x1xf32> -> vector<1x16xf32>
    %c0_7 = arith.constant 0 : index
    %c0_8 = arith.constant 0 : index
    %19 = vector.load %arg3[%c0_7, %c0_8] : memref<1x16xf32, #tpu.memory_space<vmem>>, vector<1x16xf32>
    tpu.vector_store %arg3[%c0_7, %c0_8], %18 {strides = array<i32>} : memref<1x16xf32, #tpu.memory_space<vmem>>, vector<1x16xf32>,
    return
  }
  func.func @transform_0(%arg0: i32) -> (i32, i32) {
    %c0_i32 = arith.constant 0 : i32
    %c0_i32_0 = arith.constant 0 : i32
    return %arg0, %c0_i32 : i32, i32
  }
  func.func @transform_1(%arg0: i32) -> (i32, i32) {
    %c0_i32 = arith.constant 0 : i32
    %c0_i32_0 = arith.constant 0 : i32
    %c0_i32_1 = arith.constant 0 : i32
    return %c0_i32, %c0_i32_0 : i32, i32
  }
  func.func @transform_2(%arg0: i32) -> (i32, i32) {
    %c0_i32 = arith.constant 0 : i32
    %c0_i32_0 = arith.constant 0 : i32
    return %c0_i32, %arg0 : i32, i32
  }
}

module attributes {stable_mosaic.version = 11 : i64} {
  func.func @kernel(%arg0: i32, %arg1: memref<16x128xf32, #tpu.memory_space<vmem>>, %arg2: memref<128x32xbf16, #tpu.memory_space<vmem>>, %arg3: memref<16x1xf32, #tpu.memory_space<vmem>>) attributes {dimension_semantics = [#tpu.dimension_semantics<parallel>], iteration_bounds = array<i64: 1>, scalar_prefetch = 0 : i64, scratch_operands = 0 : i64, tpu.core_type = #tpu.core_type<tc>, window_params = [{transform_indices = @transform_0, window_bounds = array<i64: 16, 128>}, {pipeline_mode = #tpu.pipeline_mode<synchronous>, transform_indices = @transform_1, window_bounds = array<i64: 128, 32>}, {transform_indices = @transform_2, window_bounds = array<i64: 16, 1>}]} {
    %c0 = arith.constant 0 : index
    %c0_0 = arith.constant 0 : index
    %0 = vector.load %arg1[%c0, %c0_0] : memref<16x128xf32, #tpu.memory_space<vmem>>, vector<16x128xf32>
    %c0_1 = arith.constant 0 : index
    %c0_2 = arith.constant 0 : index
    %1 = vector.load %arg2[%c0_1, %c0_2] : memref<128x32xbf16, #tpu.memory_space<vmem>>, vector<128x32xbf16>
    %2 = arith.truncf %0 : vector<16x128xf32> to vector<16x128xbf16>
    %3 = arith.extf %2 : vector<16x128xbf16> to vector<16x128xf32>
    %4 = arith.subf %0, %3 : vector<16x128xf32>
    %5 = arith.truncf %4 : vector<16x128xf32> to vector<16x128xbf16>
    %cst = arith.constant dense<0.000000e+00> : vector<16x32xf32>
    %6 = tpu.matmul %2, %1, %cst {dimension_numbers = #tpu.dot_dimension_numbers<[1], [0], [0], [1], [0, 0, 1, 1], [], []>} : vector<16x128xbf16>, vector<128x32xbf16>, vector<16x32xf32> -> vector<16x32xf32>
    %cst_3 = arith.constant dense<0.000000e+00> : vector<16x32xf32>
    %7 = tpu.matmul %5, %1, %cst_3 {dimension_numbers = #tpu.dot_dimension_numbers<[1], [0], [0], [1], [0, 0, 1, 1], [], []>} : vector<16x128xbf16>, vector<128x32xbf16>, vector<16x32xf32> -> vector<16x32xf32>
    %8 = arith.addf %6, %7 : vector<16x32xf32>
    %9 = arith.mulf %0, %0 : vector<16x128xf32>
    %10 = arith.mulf %8, %8 : vector<16x32xf32>
    %cst_4 = arith.constant dense<0.000000e+00> : vector<16xf32>
    %11 = vector.multi_reduction <add>, %10, %cst_4 [1] : vector<16x32xf32> to vector<16xf32>
    %12 = vector.shape_cast %11 : vector<16xf32> to vector<16x1xf32>
    %cst_5 = arith.constant dense<0.000000e+00> : vector<16xf32>
    %13 = vector.multi_reduction <add>, %9, %cst_5 [1] : vector<16x128xf32> to vector<16xf32>
    %14 = vector.shape_cast %13 : vector<16xf32> to vector<16x1xf32>
    %15 = arith.subf %12, %14 : vector<16x1xf32>
    %cst_6 = arith.constant 5.000000e-01 : f32
    %16 = vector.broadcast %cst_6 : f32 to vector<16x1xf32>
    %17 = arith.mulf %16, %15 : vector<16x1xf32>
    %c0_7 = arith.constant 0 : index
    %c0_8 = arith.constant 0 : index
    %18 = vector.load %arg3[%c0_7, %c0_8] : memref<16x1xf32, #tpu.memory_space<vmem>>, vector<16x1xf32>
    tpu.vector_store %arg3[%c0_7, %c0_8], %17 {strides = array<i32>} : memref<16x1xf32, #tpu.memory_space<vmem>>, vector<16x1xf32>,
    return
  }
  func.func @transform_0(%arg0: i32) -> (i32, i32) {
    %c0_i32 = arith.constant 0 : i32
    %c0_i32_0 = arith.constant 0 : i32
    return %arg0, %c0_i32 : i32, i32
  }
  func.func @transform_1(%arg0: i32) -> (i32, i32) {
    %c0_i32 = arith.constant 0 : i32
    %c0_i32_0 = arith.constant 0 : i32
    %c0_i32_1 = arith.constant 0 : i32
    return %c0_i32, %c0_i32_0 : i32, i32
  }
  func.func @transform_2(%arg0: i32) -> (i32, i32) {
    %c0_i32 = arith.constant 0 : i32
    %c0_i32_0 = arith.constant 0 : i32
    return %arg0, %c0_i32 : i32, i32
  }
}

</mosaic_0001>

<bundles_post_ra>
// kernel: tpu_custom_call.1
= control target key start
LH: loop header
LB: loop body
LE: loop exit
PB: predicated region body
PF: predicated region fallthrough
CT: control target
= control target key end

     0   :  { %v333_v1 = vmov 0.0   ;;  %vm334_vm0 = vmmov 0   ;;  %s384_s0 = inlined_call_operand.vmem [shape: f32[16,128], index: 0, kind: input, shape index: {}]   ;;  %s385_s1 = inlined_call_operand.vmem [shape: bf16[128,32], index: 1, kind: input, shape index: {}]   ;;  %s386_s2 = inlined_call_operand.hbm [shape: f32[1,16], index: 2, kind: output, shape index: {}]  }
   0x1   :  { %v303_v0 = vld [vmem:[%s385_s1 + $0x38] sm:$0xff]   ;;  %260 = vmatprep.subr.bf16.mxu0 %v333_v1  ;;  %280 = vmatprep.subr.bf16.mxu1 %v333_v1  ;;  %v304_v2 = vld [vmem:[%s385_s1 + $0x30] sm:$0xff]   ;;  %v305_v3 = vld [vmem:[%s385_s1 + $0x28] sm:$0xff]  }
   0x2   :  { %261 = vmatpush3.bf16.msra.mxu0 %v303_v0  ;;  %281 = vmatpush3.bf16.msra.mxu1 %v303_v0 }
   0x3   :  { %262 = vmatprep.subr.bf16.mxu0 %v333_v1  ;;  %282 = vmatprep.subr.bf16.mxu1 %v333_v1 }
   0x4   :  { %276 = vmatprep.mubr.msk.bf16.mxu0 %vm334_vm0, %v333_v1  ;;  %296 = vmatprep.mubr.msk.bf16.mxu1 %vm334_vm0, %v333_v1 }
   0x6   :  { %263 = vmatpush3.bf16.msra.mxu0 %v304_v2  ;;  %283 = vmatpush3.bf16.msra.mxu1 %v304_v2 }
   0x7   :  { %264 = vmatprep.subr.bf16.mxu0 %v333_v1  ;;  %284 = vmatprep.subr.bf16.mxu1 %v333_v1 }
   0x8   :  { %7 = vsyncpa [#allocation3], 0  ;;  %v306_v4 = vld [vmem:[%s385_s1 + $0x20] sm:$0xff]   ;;  %v307_v5 = vld [vmem:[%s385_s1 + $0x18] sm:$0xff]   ;;  %vm171_vm1 = vcmask 261120   ;;  %vm218_vm2 = vcmask 122880  }
   0x9   :  { %v13_v6 = vld [vmem:[%s384_s0] sm:$0xff]  ;;  %v14_v7 = vld [vmem:[%s384_s0 + $0x8] sm:$0xff]  ;;  %v308_v9 = vld [vmem:[%s385_s1 + $0x10] sm:$0xff]  }
   0xa   :  { %265 = vmatpush3.bf16.msra.mxu0 %v305_v3  ;;  %285 = vmatpush3.bf16.msra.mxu1 %v305_v3  ;;  %v31_v8 = vpack.c.bf16 %v14_v7, %v13_v6  ;;  %v309_v12 = vld [vmem:[%s385_s1 + $0x8] sm:$0xff]   ;;  %v310_v15 = vld [vmem:[%s385_s1] sm:$0xff]   ;;  %v167_v29 = vmul.f32 %v13_v6, %v13_v6  ;;  %v168_v32 = vmul.f32 %v14_v7, %v14_v7  ;;  %s335_s1 = smov [#allocation2]  }
   0xb   :  { %266 = vmatprep.subr.bf16.mxu0 %v333_v1  ;;  %286 = vmatprep.subr.bf16.mxu1 %v333_v1  ;;  %s226_s28 = sshll.u32 %s335_s1, 4  ;;  %s227_s28 = int_to_ptr.vmem [resolvable:$true] %s226_s28 }
   0xc   :  { %v32_v10 = vunpack.c.l.bf16 %v31_v8  ;;  %v33_v11 = vunpack.c.h.bf16 %v31_v8  ;;  %s311_s29 = scalar_lea.vmem %s227_s28, 16  ;;  %s315_s30 = scalar_lea.vmem %s227_s28, 32 }
   0xd   :  { %p312_p0 = scmp.ne.s32.totalorder %s227_s28, %s311_s29  ;;  %p316_p1 = scmp.lt.s32.totalorder %s227_s28, %s227_s28 }
   0xe   :  { %267 = vmatpush3.bf16.msra.mxu0 %v306_v4  ;;  %287 = vmatpush3.bf16.msra.mxu1 %v306_v4  ;;  %v34_v13 = vsub.f32 %v13_v6, %v32_v10  ;;  %v35_v14 = vsub.f32 %v14_v7, %v33_v11  ;;  %p317_p2 = scmp.lt.s32.totalorder %s315_s30, %s311_s29 }
   0xf   :  { %268 = vmatprep.subr.bf16.mxu0 %v333_v1  ;;  %288 = vmatprep.subr.bf16.mxu1 %v333_v1 }
  0x10   :  { %v36_v16 = vpack.c.bf16 %v35_v14, %v34_v13  ;;  %p318_p3 = por %p317_p2, %p316_p1 }
  0x12   :  { %269 = vmatpush3.bf16.msra.mxu0 %v307_v5  ;;  %289 = vmatpush3.bf16.msra.mxu1 %v307_v5  ;;  %p319_p4 = pnand %p318_p3, %p312_p0 }
  0x13   :  { %270 = vmatprep.subr.bf16.mxu0 %v333_v1  ;;  %290 = vmatprep.subr.bf16.mxu1 %v333_v1 }
  0x16   :  { %271 = vmatpush3.bf16.msra.mxu0 %v308_v9  ;;  %291 = vmatpush3.bf16.msra.mxu1 %v308_v9 }
  0x17   :  { %272 = vmatprep.subr.bf16.mxu0 %v333_v1  ;;  %292 = vmatprep.subr.bf16.mxu1 %v333_v1 }
  0x1a   :  { %273 = vmatpush3.bf16.msra.mxu0 %v309_v12  ;;  %293 = vmatpush3.bf16.msra.mxu1 %v309_v12 }
  0x1b   :  { %274 = vmatprep.subr.bf16.mxu0 %v333_v1  ;;  %294 = vmatprep.subr.bf16.mxu1 %v333_v1 }
  0x1e   :  { %275 = vmatpush3.bf16.msra.mxu0 %v310_v15  ;;  %295 = vmatpush3.bf16.msra.mxu1 %v310_v15 }
  0x21   :  { %277 = vmatmul.mubr.bf16.vlgmr.msra.gmra.mxu0 %v36_v16  ;;  %297 = vmatmul.mubr.bf16.vlgmr.msra.gmra.mxu1 %v31_v8 }
  0xe1   :  { %v119_v17 = vpop.f32.mrf.mxu0  ;;  %v160_v18 = vpop.f32.mrf.mxu1 }
  0xe2   :  { %v161_v19 = vadd.f32 %v160_v18, %v119_v17 }
  0xe3   :  { %v278_v20 = vpop.f32.mrf.mxu0  ;;  %v298_v21 = vpop.f32.mrf.mxu1 }
  0xe4   :  { %v169_v22 = vmul.f32 %v161_v19, %v161_v19 }
  0xe5   :  { %v122_v23 = vpop.f32.mrf.mxu0  ;;  %v163_v24 = vpop.f32.mrf.mxu1 }
  0xe6   :  { %v164_v25 = vadd.f32 %v163_v24, %v122_v23  ;;  %v172_v26 = vsel %vm171_vm1, %v169_v22, 0.0 }
  0xe7   :  { %v299_v27 = vpop.f32.mrf.mxu1  ;;  %173 = vadd.xlane.f32.xlu0 %v172_v26  ;;  %v279_v28 = vpop.f32.mrf.mxu0 }
  0xe8   :  { %v170_v30 = vmul.f32 %v164_v25, %v164_v25 }
  0xea   :  { %v175_v31 = vsel %vm171_vm1, %v170_v30, 0.0 }
  0xeb   :  { %178 = vadd.xlane.f32.xlu0 %v167_v29  ;;  %176 = vadd.xlane.f32.xlu1 %v175_v31 }
  0xef   :  { %180 = vadd.xlane.f32.xlu1 %v168_v32 }
 0x170   :  { %v174_v33 = vpop.xlane.xlu0 %173 }
 0x174   :  { %v179_v34 = vpop.xlane.xlu0 %178  ;;  %v177_v35 = vpop.xlane.xlu1 %176 }
 0x175   :  { %v182_v36 = vsub.f32 %v174_v33, %v179_v34 }
 0x177   :  { %v184_v37 = vmul.f32 0.5, %v182_v36 }
 0x178   :  { %v181_v38 = vpop.xlane.xlu1 %180 }
 0x179   :  { %v183_v39 = vsub.f32 %v177_v35, %v181_v38  ;;  %186 = vxpose.xlu0.b32.start [1/2] (short) (narrow) %v184_v37, 8 }
 0x17b   :  { %v185_v40 = vmul.f32 0.5, %v183_v39 }
 0x17d   :  { %187 = vxpose.xlu0.b32.end [2/2] (short) (narrow) %v185_v40, 8 }
 0x1f5   :  { %v202_v41 = vpop.trf.xlu0 }
 0x1f6   :  { %219 = vst.msk [vmem:[#allocation2] sm:$0x1] %vm218_vm2, %v202_v41 }
 0x1f7   :  { %322 = shalt.err (!%p319_p4)
}
 0x1f8   :  { %229 = dma.vmem_to_hbm [thread:$0]  %s227_s28, 16, %s386_s2, [#allocation3]  }
 0x1f9   :  { %331 = dma.done.wait [#allocation3], 16  }
 0x1fa   :  { %332 = vsyncadd [#allocation3], 4294967280 }
 0x1fb   :  { %233 = vsyncpa [#allocation3], 1 }

// kernel: tpu_custom_call.1
= control target key start
LH: loop header
LB: loop body
LE: loop exit
PB: predicated region body
PF: predicated region fallthrough
CT: control target
= control target key end

     0   :  { %v268_v0 = vmov 0.0   ;;  %vm269_vm0 = vmmov 0   ;;  %vm170_vm1 = vcmask 261120   ;;  %vm185_vm2 = vcmask 7168   ;;  %s321_s1 = inlined_call_operand.vmem [shape: bf16[128,32], index: 1, kind: input, shape index: {}]   ;;  %s322_s0 = inlined_call_operand.vmem [shape: f32[16,128], index: 0, kind: input, shape index: {}]   ;;  %s323_s2 = inlined_call_operand.vmem [shape: f32[16,1], index: 2, kind: output, shape index: {}]  }
   0x1   :  { %218 = vmatprep.subr.bf16.mxu0 %v268_v0  ;;  %238 = vmatprep.subr.bf16.mxu1 %v268_v0  ;;  %v260_v1 = vld [vmem:[%s321_s1 + $0x38] sm:$0xff]   ;;  %v261_v2 = vld [vmem:[%s321_s1 + $0x30] sm:$0xff]   ;;  %v262_v3 = vld [vmem:[%s321_s1 + $0x28] sm:$0xff]  }
   0x2   :  { %234 = vmatprep.mubr.msk.bf16.mxu0 %vm269_vm0, %v268_v0  ;;  %254 = vmatprep.mubr.msk.bf16.mxu1 %vm269_vm0, %v268_v0  ;;  %v263_v4 = vld [vmem:[%s321_s1 + $0x20] sm:$0xff]   ;;  %v264_v5 = vld [vmem:[%s321_s1 + $0x18] sm:$0xff]   ;;  %v13_v7 = vld [vmem:[%s322_s0 + $0x8] sm:$0xff] }
   0x3   :  { %219 = vmatpush3.bf16.msra.mxu0 %v260_v1  ;;  %239 = vmatpush3.bf16.msra.mxu1 %v260_v1  ;;  %v12_v6 = vld [vmem:[%s322_s0] sm:$0xff]  ;;  %v265_v9 = vld [vmem:[%s321_s1 + $0x10] sm:$0xff]   ;;  %v266_v12 = vld [vmem:[%s321_s1 + $0x8] sm:$0xff]   ;;  %v167_v18 = vmul.f32 %v13_v7, %v13_v7 }
   0x4   :  { %220 = vmatprep.subr.bf16.mxu0 %v268_v0  ;;  %240 = vmatprep.subr.bf16.mxu1 %v268_v0  ;;  %v30_v8 = vpack.c.bf16 %v13_v7, %v12_v6  ;;  %v267_v15 = vld [vmem:[%s321_s1] sm:$0xff]   ;;  %v166_v17 = vmul.f32 %v12_v6, %v12_v6 }
   0x6   :  { %v31_v10 = vunpack.c.l.bf16 %v30_v8  ;;  %v32_v11 = vunpack.c.h.bf16 %v30_v8  ;;  %177 = vadd.xlane.f32.xlu1 %v166_v17 }
   0x7   :  { %221 = vmatpush3.bf16.msra.mxu0 %v261_v2  ;;  %241 = vmatpush3.bf16.msra.mxu1 %v261_v2 }
   0x8   :  { %222 = vmatprep.subr.bf16.mxu0 %v268_v0  ;;  %242 = vmatprep.subr.bf16.mxu1 %v268_v0  ;;  %v33_v13 = vsub.f32 %v12_v6, %v31_v10  ;;  %v34_v14 = vsub.f32 %v13_v7, %v32_v11 }
   0xa   :  { %v35_v16 = vpack.c.bf16 %v34_v14, %v33_v13  ;;  %179 = vadd.xlane.f32.xlu1 %v167_v18 }
   0xb   :  { %223 = vmatpush3.bf16.msra.mxu0 %v262_v3  ;;  %243 = vmatpush3.bf16.msra.mxu1 %v262_v3 }
   0xc   :  { %224 = vmatprep.subr.bf16.mxu0 %v268_v0  ;;  %244 = vmatprep.subr.bf16.mxu1 %v268_v0 }
   0xf   :  { %225 = vmatpush3.bf16.msra.mxu0 %v263_v4  ;;  %245 = vmatpush3.bf16.msra.mxu1 %v263_v4 }
  0x10   :  { %226 = vmatprep.subr.bf16.mxu0 %v268_v0  ;;  %246 = vmatprep.subr.bf16.mxu1 %v268_v0 }
  0x13   :  { %227 = vmatpush3.bf16.msra.mxu0 %v264_v5  ;;  %247 = vmatpush3.bf16.msra.mxu1 %v264_v5 }
  0x14   :  { %228 = vmatprep.subr.bf16.mxu0 %v268_v0  ;;  %248 = vmatprep.subr.bf16.mxu1 %v268_v0 }
  0x17   :  { %229 = vmatpush3.bf16.msra.mxu0 %v265_v9  ;;  %249 = vmatpush3.bf16.msra.mxu1 %v265_v9 }
  0x18   :  { %230 = vmatprep.subr.bf16.mxu0 %v268_v0  ;;  %250 = vmatprep.subr.bf16.mxu1 %v268_v0 }
  0x1b   :  { %231 = vmatpush3.bf16.msra.mxu0 %v266_v12  ;;  %251 = vmatpush3.bf16.msra.mxu1 %v266_v12 }
  0x1c   :  { %232 = vmatprep.subr.bf16.mxu0 %v268_v0  ;;  %252 = vmatprep.subr.bf16.mxu1 %v268_v0 }
  0x1f   :  { %233 = vmatpush3.bf16.msra.mxu0 %v267_v15  ;;  %253 = vmatpush3.bf16.msra.mxu1 %v267_v15 }
  0x22   :  { %235 = vmatmul.mubr.bf16.vlgmr.msra.gmra.mxu0 %v35_v16  ;;  %255 = vmatmul.mubr.bf16.vlgmr.msra.gmra.mxu1 %v30_v8 }
  0x8f   :  { %v178_v33 = vpop.xlane.xlu1 %177 }
  0x93   :  { %v180_v36 = vpop.xlane.xlu1 %179 }
  0xe2   :  { %v118_v19 = vpop.f32.mrf.mxu0  ;;  %v159_v20 = vpop.f32.mrf.mxu1 }
  0xe3   :  { %v160_v21 = vadd.f32 %v159_v20, %v118_v19 }
  0xe4   :  { %v236_v22 = vpop.f32.mrf.mxu0  ;;  %v256_v23 = vpop.f32.mrf.mxu1 }
  0xe5   :  { %v168_v24 = vmul.f32 %v160_v21, %v160_v21 }
  0xe6   :  { %v121_v25 = vpop.f32.mrf.mxu0  ;;  %v162_v26 = vpop.f32.mrf.mxu1 }
  0xe7   :  { %v163_v27 = vadd.f32 %v162_v26, %v121_v25  ;;  %v171_v28 = vsel %vm170_vm1, %v168_v24, 0.0 }
  0xe8   :  { %v257_v29 = vpop.f32.mrf.mxu1  ;;  %172 = vadd.xlane.f32.xlu0 %v171_v28  ;;  %v237_v30 = vpop.f32.mrf.mxu0 }
  0xe9   :  { %v169_v31 = vmul.f32 %v163_v27, %v163_v27 }
  0xeb   :  { %v174_v32 = vsel %vm170_vm1, %v169_v31, 0.0 }
  0xec   :  { %175 = vadd.xlane.f32.xlu0 %v174_v32 }
 0x171   :  { %v173_v34 = vpop.xlane.xlu0 %172 }
 0x172   :  { %v181_v35 = vsub.f32 %v173_v34, %v178_v33 }
 0x174   :  { %v183_v37 = vmul.f32 0.5, %v181_v35 }
 0x175   :  { %v176_v38 = vpop.xlane.xlu0 %175 }
 0x176   :  { %186 = vst.msk [vmem:[%s323_s2] sm:$0xff] %vm185_vm2, %v183_v37  ;;  %v182_v39 = vsub.f32 %v176_v38, %v180_v36 }
 0x178   :  { %v184_v40 = vmul.f32 0.5, %v182_v39 }
 0x17a   :  { %187 = vst.msk [vmem:[%s323_s2 + $0x8] sm:$0xff] %vm185_vm2, %v184_v40 }

</bundles_post_ra>
